<compile_context>
chip_gen: v7x
topology: tpu7x:2x2x1
jax: 0.10.0
libtpu: 0.0.40
codegen_flags: <defaults>
</compile_context>

<pallas_src>
import functools

import jax
import jax.numpy as jnp
from jax.experimental import pallas as pl
from jax.experimental.pallas import tpu as pltpu


def _round_up(x, m):
    return (x + m - 1) // m * m


# ---------------------------------------------------------------------------
# Kernels
# ---------------------------------------------------------------------------
def _stats_only_kernel(xs_ref, w_ref, sum_ref, sq_ref):
    """Pass 1 (recompute path): conv tile -> per-channel partial sum / sum-of-squares."""
    acc = jnp.dot(xs_ref[...], w_ref[...], preferred_element_type=jnp.float32)
    sum_ref[0] = jnp.sum(acc, axis=0, keepdims=True)
    sq_ref[0] = jnp.sum(acc * acc, axis=0, keepdims=True)


def _conv_bn_relu_kernel(xs_ref, w_ref, scale_ref, shift_ref, o_ref):
    """Pass 2 (recompute path): redo the conv matmul, fused BN affine + ReLU."""
    acc = jnp.dot(xs_ref[...], w_ref[...], preferred_element_type=jnp.float32)
    o_ref[...] = jnp.maximum(acc * scale_ref[...] + shift_ref[...], 0.0).astype(o_ref.dtype)


def _conv_stats_kernel(xs_ref, w_ref, y_ref, sum_ref, sq_ref):
    """Pass 1 (y path): conv tile stored in compute dtype + partial stats from the f32 acc."""
    acc = jnp.dot(xs_ref[...], w_ref[...], preferred_element_type=jnp.float32)
    y_ref[...] = acc.astype(y_ref.dtype)
    sum_ref[0] = jnp.sum(acc, axis=0, keepdims=True)
    sq_ref[0] = jnp.sum(acc * acc, axis=0, keepdims=True)


def _bn_relu_kernel(y_ref, scale_ref, shift_ref, o_ref):
    """Pass 2 (y path): fused BN affine + ReLU (upcast to f32 for the FMA)."""
    y = y_ref[...].astype(jnp.float32)
    o_ref[...] = jnp.maximum(y * scale_ref[...] + shift_ref[...], 0.0).astype(o_ref.dtype)


# ---------------------------------------------------------------------------
# Wrapper
# ---------------------------------------------------------------------------
@functools.partial(jax.jit, static_argnames=("eps", "tile_rows", "compute_dtype"))
def forward_block(x, w, gamma, beta, *, eps=1e-5, tile_rows=None,
                  compute_dtype=jnp.bfloat16):
    """x: (B, L, Cin); w: (K, Cin, Cout); gamma/beta: (Cout,). Returns (B, L, Cout) in x.dtype."""
    B, L, Cin = x.shape
    K, _, Cout = w.shape
    pad = K // 2
    M = B * L
    KCin = K * Cin
    out_dtype = x.dtype
    cd_bytes = jnp.dtype(compute_dtype).itemsize

    # --- cast FIRST, then replicate-pad + tap-stack (static layout prep; fuses under jit) ---
    # TODO(synk): longer term, read overlapping (TM + 2*pad, Cin) halo windows of the padded
    # input directly (memory_space=pl.ANY + manual DMA) instead of materializing the
    # K-times-stacked operand.
    xc = x.astype(compute_dtype)
    wc = w.astype(compute_dtype)
    xp = jnp.pad(xc, ((0, 0), (pad, pad), (0, 0)), mode="edge")
    xs = jnp.concatenate([xp[:, k:k + L, :] for k in range(K)], axis=-1).reshape(M, KCin)
    w2 = wc.reshape(KCin, Cout)

    gamma32 = gamma.reshape(-1).astype(jnp.float32)
    beta32 = beta.reshape(-1).astype(jnp.float32)

    # --- generation-aware tile size / VMEM budget ---
    try:
        vmem_cap = int(pltpu.get_tpu_info().vmem_capacity_bytes)
    except Exception:  # conservative fallback if the query is unavailable
        vmem_cap = 64 << 20
    if vmem_cap >= (96 << 20):          # v5e / v6e: 128 MiB VMEM
        default_tm, vmem_clamp = 2048, 96 << 20
    else:                               # v7x: 64 MiB per TensorCore
        default_tm, vmem_clamp = 1024, 40 << 20

    def _tile_bytes(tm):
        xs_t = tm * KCin * cd_bytes
        out_t = tm * Cout * 4            # worst case (f32 out / acc)
        w_t = KCin * Cout * cd_bytes
        return 2 * (xs_t + out_t) + w_t + 16 * Cout * 4   # 2x = double buffering

    TM = _round_up(min(tile_rows or default_tm, _round_up(M, 8)), 8)
    while TM > 128 and _tile_bytes(TM) > vmem_clamp - (8 << 20):
        TM = _round_up(max(TM // 2, 128), 8)
    M_pad = _round_up(M, TM)
    if M_pad != M:
        # Zero-padded rows contribute exactly 0 to the BN sums; this relies on
        # conv_bias=False (an additive bias would corrupt mean/var via pad rows).
        xs = jnp.pad(xs, ((0, M_pad - M), (0, 0)))
    n_tiles = M_pad // TM

    cparams = pltpu.CompilerParams(dimension_semantics=("parallel",),
                                   vmem_limit_bytes=int(vmem_clamp))

    # Recompute path when re-reading xs in pass 2 is cheaper than a y HBM round trip.
    recompute = KCin <= 2 * Cout

    xs_spec = pl.BlockSpec((TM, KCin), lambda i: (i, 0))
    w_spec = pl.BlockSpec((KCin, Cout), lambda i: (0, 0))
    row_spec = pl.BlockSpec((TM, Cout), lambda i: (i, 0))
    vec_spec = pl.BlockSpec((1, Cout), lambda i: (0, 0))
    stats_spec = pl.BlockSpec((1, 1, Cout), lambda i: (i, 0, 0))
    stats_shape = jax.ShapeDtypeStruct((n_tiles, 1, Cout), jnp.float32)

    # --- pass 1: conv (+ optional y) + per-tile BN partial stats ---
    if recompute:
        sum_parts, sq_parts = pl.pallas_call(
            _stats_only_kernel,
            grid=(n_tiles,),
            in_specs=[xs_spec, w_spec],
            out_specs=[stats_spec, stats_spec],
            out_shape=[stats_shape, stats_shape],
            compiler_params=cparams,
        )(xs, w2)
        y = None
    else:
        y, sum_parts, sq_parts = pl.pallas_call(
            _conv_stats_kernel,
            grid=(n_tiles,),
            in_specs=[xs_spec, w_spec],
            out_specs=[row_spec, stats_spec, stats_spec],
            out_shape=[jax.ShapeDtypeStruct((M_pad, Cout), compute_dtype),
                       stats_shape, stats_shape],
            compiler_params=cparams,
        )(xs, w2)

    # --- tiny cross-tile combine: fold training-BN into a per-channel scale/shift ---
    sum_tot = jnp.sum(sum_parts, axis=0).reshape(Cout)
    sq_tot = jnp.sum(sq_parts, axis=0).reshape(Cout)
    mean = sum_tot / M
    # E[x^2] - E[x]^2 in f32: documented cancellation risk only when |mean| >> std at huge B*L.
    var = jnp.maximum(sq_tot / M - mean * mean, 0.0)     # biased var (PyTorch training BN)
    inv_std = jax.lax.rsqrt(var + eps)
    scale = (gamma32 * inv_std).reshape(1, Cout)
    shift = (beta32 - mean * gamma32 * inv_std).reshape(1, Cout)

    # --- pass 2: normalize + ReLU ---
    if recompute:
        out = pl.pallas_call(
            _conv_bn_relu_kernel,
            grid=(n_tiles,),
            in_specs=[xs_spec, w_spec, vec_spec, vec_spec],
            out_specs=row_spec,
            out_shape=jax.ShapeDtypeStruct((M_pad, Cout), out_dtype),
            compiler_params=cparams,
        )(xs, w2, scale, shift)
    else:
        io_alias = {0: 0} if jnp.dtype(compute_dtype) == jnp.dtype(out_dtype) else {}
        out = pl.pallas_call(
            _bn_relu_kernel,
            grid=(n_tiles,),
            in_specs=[row_spec, vec_spec, vec_spec],
            out_specs=row_spec,
            out_shape=jax.ShapeDtypeStruct((M_pad, Cout), out_dtype),
            input_output_aliases=io_alias,
            compiler_params=cparams,
        )(y, scale, shift)

    return out[:M].reshape(B, L, Cout)


class TokenEmbeddingPallas:
    """Mirrors TokenEmbedding / Forward_block stack with default args
    (kernel_size=3, stride=1, bias=False, replicate pad, batch norm, relu, no max-pool)."""

    def __init__(self, c_in, token_d_model, kernel_size=3, n_conv_layers=1,
                 in_planes=None, key=None):
        in_planes = in_planes or int(token_d_model / 2)
        n_filter_list = [c_in] + [in_planes] * (n_conv_layers - 1) + [token_d_model]
        key = key if key is not None else jax.random.PRNGKey(0)
        self.params = []
        for i in range(n_conv_layers):
            key, wk = jax.random.split(key)
            cin, cout = n_filter_list[i], n_filter_list[i + 1]
            w = (jax.random.normal(wk, (kernel_size, cin, cout), jnp.float32)
                 * (1.0 / jnp.sqrt(cin * kernel_size)))
            gamma = jnp.ones((cout,), jnp.float32)
            beta = jnp.zeros((cout,), jnp.float32)
            self.params.append((w, gamma, beta))

    def __call__(self, x, compute_dtype=jnp.bfloat16):
        # TODO(synk): max_pool / 'layer' norm / light_weight DW_PW branches not implemented
        # (defaults in the spec don't exercise them).
        for (w, gamma, beta) in self.params:
            x = forward_block(x, w, gamma, beta, compute_dtype=compute_dtype)
        return x


def _reference(x, params, eps=1e-5):
    """Pure-jnp f32 reference matching PyTorch semantics (replicate pad, training BN, relu)."""
    for (w, gamma, beta) in params:
        K = w.shape[0]
        pad = K // 2
        L = x.shape[1]
        xp = jnp.pad(x, ((0, 0), (pad, pad), (0, 0)), mode="edge")
        y = sum(jnp.einsum("blc,cd->bld", xp[:, k:k + L, :], w[k]) for k in range(K))
        mean = y.mean(axis=(0, 1))
        var = ((y - mean) ** 2).mean(axis=(0, 1))
        y = gamma * (y - mean) / jnp.sqrt(var + eps) + beta
        x = jnp.maximum(y, 0.0)
    return x


if __name__ == "__main__":
    key = jax.random.PRNGKey(0)
    kx, kp = jax.random.split(key)

    B, L, c_in, token_d_model = 2, 16, 4, 32
    x = jax.random.normal(kx, (B, L, c_in), jnp.float32)

    model = TokenEmbeddingPallas(c_in=c_in, token_d_model=token_d_model,
                                 kernel_size=3, n_conv_layers=1, key=kp)
    ref = _reference(x, model.params)

    # exact-parity path (f32 compute, recompute path: KCin=12 <= 2*Cout)
    out_f32 = jax.block_until_ready(model(x, compute_dtype=jnp.float32))
    assert out_f32.shape == (B, L, token_d_model)
    assert jnp.allclose(out_f32, ref, atol=1e-3, rtol=1e-3), "f32 mismatch vs reference"

    # default fast path (bf16 MXU inputs, f32 accumulation / BN stats)
    out_bf16 = jax.block_until_ready(model(x))
    assert out_bf16.shape == (B, L, token_d_model)
    assert jnp.allclose(out_bf16, ref, atol=3e-2, rtol=3e-2), "bf16 path mismatch vs reference"

    # exercise the y-intermediate + in-place-aliased path (KCin=96 > 2*Cout=32)
    kx2, kw2 = jax.random.split(kp)
    x2 = jax.random.normal(kx2, (2, 16, 32), jnp.float32)
    w2 = jax.random.normal(kw2, (3, 32, 16), jnp.float32) * (1.0 / jnp.sqrt(32 * 3))
    g2 = jnp.ones((16,), jnp.float32)
    b2 = jnp.zeros((16,), jnp.float32)
    out2 = jax.block_until_ready(forward_block(x2, w2, g2, b2, compute_dtype=jnp.float32))
    ref2 = _reference(x2, [(w2, g2, b2)])
    assert jnp.allclose(out2, ref2, atol=1e-3, rtol=1e-3), "y-path mismatch vs reference"

    print("KERNEL_OK")
</pallas_src>

<mosaic_0001>
module attributes {stable_mosaic.version = 11 : i64} {
  func.func @_stats_only_kernel(%arg0: i32, %arg1: memref<32x12xf32, #tpu.memory_space<vmem>>, %arg2: memref<12x32xf32, #tpu.memory_space<vmem>>, %arg3: memref<1x1x32xf32, #tpu.memory_space<vmem>>, %arg4: memref<1x1x32xf32, #tpu.memory_space<vmem>>) attributes {dimension_semantics = [#tpu.dimension_semantics<parallel>], iteration_bounds = array<i64: 1>, scalar_prefetch = 0 : i64, scratch_operands = 0 : i64, tpu.core_type = #tpu.core_type<tc>, window_params = [{transform_indices = @transform_0, window_bounds = array<i64: 32, 12>}, {pipeline_mode = #tpu.pipeline_mode<synchronous>, transform_indices = @transform_1, window_bounds = array<i64: 12, 32>}, {transform_indices = @transform_2, window_bounds = array<i64: 1, 1, 32>}, {transform_indices = @transform_3, window_bounds = array<i64: 1, 1, 32>}]} {
    %c0 = arith.constant 0 : index
    %c0_0 = arith.constant 0 : index
    %0 = vector.load %arg1[%c0, %c0_0] : memref<32x12xf32, #tpu.memory_space<vmem>>, vector<32x12xf32>
    %c0_1 = arith.constant 0 : index
    %c0_2 = arith.constant 0 : index
    %1 = vector.load %arg2[%c0_1, %c0_2] : memref<12x32xf32, #tpu.memory_space<vmem>>, vector<12x32xf32>
    %cst = arith.constant dense<0.000000e+00> : vector<32x32xf32>
    %2 = tpu.matmul %0, %1, %cst {dimension_numbers = #tpu.dot_dimension_numbers<[1], [0], [0], [1], [0, 0, 1, 1], [], []>} : vector<32x12xf32>, vector<12x32xf32>, vector<32x32xf32> -> vector<32x32xf32>
    %cst_3 = arith.constant dense<0.000000e+00> : vector<32xf32>
    %3 = vector.multi_reduction <add>, %2, %cst_3 [0] : vector<32x32xf32> to vector<32xf32>
    %4 = vector.shape_cast %3 : vector<32xf32> to vector<1x32xf32>
    %c0_4 = arith.constant 0 : index
    %c0_5 = arith.constant 0 : index
    %c0_6 = arith.constant 0 : index
    %5 = vector.load %arg3[%c0_4, %c0_5, %c0_6] : memref<1x1x32xf32, #tpu.memory_space<vmem>>, vector<1x1x32xf32>
    %6 = vector.shape_cast %5 : vector<1x1x32xf32> to vector<1x32xf32>
    %7 = vector.shape_cast %4 : vector<1x32xf32> to vector<1x1x32xf32>
    tpu.vector_store %arg3[%c0_4, %c0_5, %c0_6], %7 {strides = array<i32>} : memref<1x1x32xf32, #tpu.memory_space<vmem>>, vector<1x1x32xf32>,
    %8 = arith.mulf %2, %2 : vector<32x32xf32>
    %cst_7 = arith.constant dense<0.000000e+00> : vector<32xf32>
    %9 = vector.multi_reduction <add>, %8, %cst_7 [0] : vector<32x32xf32> to vector<32xf32>
    %10 = vector.shape_cast %9 : vector<32xf32> to vector<1x32xf32>
    %c0_8 = arith.constant 0 : index
    %c0_9 = arith.constant 0 : index
    %c0_10 = arith.constant 0 : index
    %11 = vector.load %arg4[%c0_8, %c0_9, %c0_10] : memref<1x1x32xf32, #tpu.memory_space<vmem>>, vector<1x1x32xf32>
    %12 = vector.shape_cast %11 : vector<1x1x32xf32> to vector<1x32xf32>
    %13 = vector.shape_cast %10 : vector<1x32xf32> to vector<1x1x32xf32>
    tpu.vector_store %arg4[%c0_8, %c0_9, %c0_10], %13 {strides = array<i32>} : memref<1x1x32xf32, #tpu.memory_space<vmem>>, vector<1x1x32xf32>,
    return
  }
  func.func @transform_0(%arg0: i32) -> (i32, i32) {
    %c0_i32 = arith.constant 0 : i32
    %c0_i32_0 = arith.constant 0 : i32
    return %arg0, %c0_i32 : i32, i32
  }
  func.func @transform_1(%arg0: i32) -> (i32, i32) {
    %c0_i32 = arith.constant 0 : i32
    %c0_i32_0 = arith.constant 0 : i32
    %c0_i32_1 = arith.constant 0 : i32
    return %c0_i32, %c0_i32_0 : i32, i32
  }
  func.func @transform_2(%arg0: i32) -> (i32, i32, i32) {
    %c0_i32 = arith.constant 0 : i32
    %c0_i32_0 = arith.constant 0 : i32
    %c0_i32_1 = arith.constant 0 : i32
    return %arg0, %c0_i32, %c0_i32_0 : i32, i32, i32
  }
  func.func @transform_3(%arg0: i32) -> (i32, i32, i32) {
    %c0_i32 = arith.constant 0 : i32
    %c0_i32_0 = arith.constant 0 : i32
    %c0_i32_1 = arith.constant 0 : i32
    return %arg0, %c0_i32, %c0_i32_0 : i32, i32, i32
  }
}

module attributes {stable_mosaic.version = 11 : i64} {
  func.func @_conv_bn_relu_kernel(%arg0: i32, %arg1: memref<32x12xf32, #tpu.memory_space<vmem>>, %arg2: memref<12x32xf32, #tpu.memory_space<vmem>>, %arg3: memref<1x32xf32, #tpu.memory_space<vmem>>, %arg4: memref<1x32xf32, #tpu.memory_space<vmem>>, %arg5: memref<32x32xf32, #tpu.memory_space<vmem>>) attributes {dimension_semantics = [#tpu.dimension_semantics<parallel>], iteration_bounds = array<i64: 1>, scalar_prefetch = 0 : i64, scratch_operands = 0 : i64, tpu.core_type = #tpu.core_type<tc>, window_params = [{transform_indices = @transform_0, window_bounds = array<i64: 32, 12>}, {pipeline_mode = #tpu.pipeline_mode<synchronous>, transform_indices = @transform_1, window_bounds = array<i64: 12, 32>}, {pipeline_mode = #tpu.pipeline_mode<synchronous>, transform_indices = @transform_2, window_bounds = array<i64: 1, 32>}, {pipeline_mode = #tpu.pipeline_mode<synchronous>, transform_indices = @transform_3, window_bounds = array<i64: 1, 32>}, {transform_indices = @transform_4, window_bounds = array<i64: 32, 32>}]} {
    %c0 = arith.constant 0 : index
    %c0_0 = arith.constant 0 : index
    %0 = vector.load %arg1[%c0, %c0_0] : memref<32x12xf32, #tpu.memory_space<vmem>>, vector<32x12xf32>
    %c0_1 = arith.constant 0 : index
    %c0_2 = arith.constant 0 : index
    %1 = vector.load %arg2[%c0_1, %c0_2] : memref<12x32xf32, #tpu.memory_space<vmem>>, vector<12x32xf32>
    %cst = arith.constant dense<0.000000e+00> : vector<32x32xf32>
    %2 = tpu.matmul %0, %1, %cst {dimension_numbers = #tpu.dot_dimension_numbers<[1], [0], [0], [1], [0, 0, 1, 1], [], []>} : vector<32x12xf32>, vector<12x32xf32>, vector<32x32xf32> -> vector<32x32xf32>
    %c0_3 = arith.constant 0 : index
    %c0_4 = arith.constant 0 : index
    %3 = vector.load %arg3[%c0_3, %c0_4] : memref<1x32xf32, #tpu.memory_space<vmem>>, vector<1x32xf32>
    %4 = vector.broadcast %3 : vector<1x32xf32> to vector<32x32xf32>
    %5 = arith.mulf %2, %4 : vector<32x32xf32>
    %c0_5 = arith.constant 0 : index
    %c0_6 = arith.constant 0 : index
    %6 = vector.load %arg4[%c0_5, %c0_6] : memref<1x32xf32, #tpu.memory_space<vmem>>, vector<1x32xf32>
    %7 = vector.broadcast %6 : vector<1x32xf32> to vector<32x32xf32>
    %8 = arith.addf %5, %7 : vector<32x32xf32>
    %cst_7 = arith.constant 0.000000e+00 : f32
    %9 = vector.broadcast %cst_7 : f32 to vector<32x32xf32>
    %10 = arith.maximumf %8, %9 : vector<32x32xf32>
    %c0_8 = arith.constant 0 : index
    %c0_9 = arith.constant 0 : index
    %11 = vector.load %arg5[%c0_8, %c0_9] : memref<32x32xf32, #tpu.memory_space<vmem>>, vector<32x32xf32>
    tpu.vector_store %arg5[%c0_8, %c0_9], %10 {strides = array<i32>} : memref<32x32xf32, #tpu.memory_space<vmem>>, vector<32x32xf32>,
    return
  }
  func.func @transform_0(%arg0: i32) -> (i32, i32) {
    %c0_i32 = arith.constant 0 : i32
    %c0_i32_0 = arith.constant 0 : i32
    return %arg0, %c0_i32 : i32, i32
  }
  func.func @transform_1(%arg0: i32) -> (i32, i32) {
    %c0_i32 = arith.constant 0 : i32
    %c0_i32_0 = arith.constant 0 : i32
    %c0_i32_1 = arith.constant 0 : i32
    return %c0_i32, %c0_i32_0 : i32, i32
  }
  func.func @transform_2(%arg0: i32) -> (i32, i32) {
    %c0_i32 = arith.constant 0 : i32
    %c0_i32_0 = arith.constant 0 : i32
    %c0_i32_1 = arith.constant 0 : i32
    return %c0_i32, %c0_i32_0 : i32, i32
  }
  func.func @transform_3(%arg0: i32) -> (i32, i32) {
    %c0_i32 = arith.constant 0 : i32
    %c0_i32_0 = arith.constant 0 : i32
    %c0_i32_1 = arith.constant 0 : i32
    return %c0_i32, %c0_i32_0 : i32, i32
  }
  func.func @transform_4(%arg0: i32) -> (i32, i32) {
    %c0_i32 = arith.constant 0 : i32
    %c0_i32_0 = arith.constant 0 : i32
    return %arg0, %c0_i32 : i32, i32
  }
}

</mosaic_0001>

<bundles_post_ra>
// kernel: forward_block.3
= control target key start
LH: loop header
LB: loop body
LE: loop exit
PB: predicated region body
PF: predicated region fallthrough
CT: control target
= control target key end

     0   :  { %vm37_vm0 = vcmask 1043456   ;;  %vm232_vm1 = vmmov 1   ;;  %vm24_vm3 = vcmask 97280   ;;  %s297_s0 = inlined_call_operand.vmem [shape: f32[32,12], index: 0, kind: input, shape index: {}]   ;;  %s298_s1 = inlined_call_operand.vmem [shape: f32[12,32], index: 1, kind: input, shape index: {}]   ;;  %s299_s2 = inlined_call_operand.vmem [shape: f32[1,32], index: 2, kind: input, shape index: {}]   ;;  %s300_s3 = inlined_call_operand.vmem [shape: f32[1,32], index: 3, kind: input, shape index: {}]   ;;  %s301_s4 = inlined_call_operand.hbm [shape: f32[32,32], index: 4, kind: output, shape index: {}]  }
   0x1   :  { %v22_v0 = vld [vmem:[%s298_s1] sm:$0xff]  ;;  %v23_v1 = vld [vmem:[%s298_s1 + $0x8] sm:$0xf]  ;;  %vm197_vm2 = vmpackc.low %vm37_vm0, %vm232_vm1 }
   0x2   :  { %v18_v2 = vld [vmem:[%s297_s0] sm:$0xff]  ;;  %v196_v3 = vpack.c.bf16 %v23_v1, %v22_v0  ;;  %v20_v4 = vld [vmem:[%s297_s0 + $0x10] sm:$0xff] }
   0x3   :  { %190 = vmatprep.mubr.msk.f32.mxu0 %vm24_vm3, %v18_v2  ;;  %193 = vmatprep.mubr.msk.f32.mxu1 %vm24_vm3, %v20_v4 }
   0x4   :  { %9 = vsyncpa [#allocation3], 0  ;;  %198 = vmatprep.subr.msk.bf16.mxu0 %vm197_vm2, %v196_v3  ;;  %202 = vmatprep.subr.msk.bf16.mxu1 %vm197_vm2, %v196_v3  ;;  %v19_v5 = vld [vmem:[%s297_s0 + $0x8] sm:$0xff]  ;;  %v21_v6 = vld [vmem:[%s297_s0 + $0x18] sm:$0xff]  ;;  %s233_s30 = smov [#allocation2]   ;;  %vm152_vm4 = vcmask 261120  }
   0x5   :  { %201 = vmatpush3.bf16.msk.msra.mxu0 %vm197_vm2, %v196_v3  ;;  %203 = vmatpush3.bf16.msk.msra.mxu1 %vm197_vm2, %v196_v3  ;;  %v178_v7 = vld [vmem:[%s299_s2] ss:$0 sm:$0xff]  ;;  %s162_s0 = sshll.u32 %s233_s30, 4  ;;  %s163_s0 = int_to_ptr.vmem [resolvable:$true] %s162_s0 }
   0x6   :  { %v179_v9 = vld [vmem:[%s300_s3] ss:$0 sm:$0xff]  ;;  %s208_s2 = scalar_lea.vmem %s163_s0, 512  ;;  %p213_p1 = scmp.lt.s32.totalorder %s163_s0, %s163_s0 }
   0x7   :  { %p209_p0 = scmp.ne.s32.totalorder %s163_s0, %s208_s2  ;;  %p214_p2 = scmp.lt.s32.totalorder %s208_s2, %s208_s2 }
   0x8   :  { %191 = vmatmul.mubr.msk.f32.vlgmr.msra.gmra.mrb[0].mxu0 %vm24_vm3, %v19_v5  ;;  %194 = vmatmul.mubr.msk.f32.vlgmr.msra.gmra.mrb[0].mxu1 %vm24_vm3, %v21_v6 }
   0x9   :  { %p215_p3 = por %p214_p2, %p213_p1 }
   0xb   :  { %p216_p4 = pnand %p215_p3, %p209_p0 }
  0xdb   :  { %v192_v8 = vpop.f32.mrb[0].mxu0  ;;  %v195_v10 = vpop.f32.mrb[0].mxu1 }
  0xdc   :  { %v134_v11 = vmul.f32 %v192_v8, %v178_v7  ;;  %v136_v12 = vmul.f32 %v195_v10, %v178_v7  ;;  %v107_v13 = vpop.f32.mrb[1].mxu0  ;;  %v117_v14 = vpop.f32.mrb[1].mxu1 }
  0xdd   :  { %v133_v15 = vmul.f32 %v178_v7, %v107_v13  ;;  %v135_v16 = vmul.f32 %v178_v7, %v117_v14 }
  0xde   :  { %v145_v17 = vadd.f32 %v179_v9, %v134_v11  ;;  %v147_v18 = vadd.f32 %v179_v9, %v136_v12 }
  0xdf   :  { %v144_v19 = vadd.f32 %v179_v9, %v133_v15  ;;  %v146_v20 = vadd.f32 %v179_v9, %v135_v16 }
  0xe0   :  { %v149_v21 = vmax.f32 %v145_v17, 0.0  ;;  %v151_v22 = vmax.f32 %v147_v18, 0.0 }
  0xe1   :  { %v148_v23 = vmax.f32 %v144_v19, 0.0  ;;  %v150_v24 = vmax.f32 %v146_v20, 0.0 }
  0xe2   :  { %154 = vst.msk [vmem:[#allocation2 + $0x8] sm:$0xff] %vm152_vm4, %v149_v21  ;;  %156 = vst.msk [vmem:[#allocation2 + $0x18] sm:$0xff] %vm152_vm4, %v151_v22 }
  0xe3   :  { %153 = vst.msk [vmem:[#allocation2] sm:$0xff] %vm152_vm4, %v148_v23  ;;  %155 = vst.msk [vmem:[#allocation2 + $0x10] sm:$0xff] %vm152_vm4, %v150_v24 }
  0xe4   :  { %219 = shalt.err (!%p216_p4)
}
  0xe5   :  { %s220_s6 = scalar_lea.hbm %s301_s4, 512 }
  0xe6   :  { %p221_p5 = scmp.ne.s32.totalorder %s301_s4, %s220_s6  ;;  %p224_p6 = scmp.lt.u32.totalorder %s220_s6, %s301_s4 }
  0xe8   :  { %p226_p7 = pnand %p224_p6, %p221_p5 }
  0xea   :  { %229 = shalt.err (!%p226_p7)
}
  0xeb   :  { %s234_s11 = smov 128   ;;  %s235_s12 = smov 8  }
  0xec   :  { %168 = dma.vmem_to_hbm [thread:$0]  %s163_s0, 512, %s301_s4, [#allocation3], %s234_s11, %s234_s11, %s235_s12  }
  0xed   :  { %230 = dma.done.wait [#allocation3], 512  }
  0xee   :  { %231 = vsyncadd [#allocation3], 4294966784 }
  0xef   :  { %172 = vsyncpa [#allocation3], 1 }

// kernel: forward_block.2
= control target key start
LH: loop header
LB: loop body
LE: loop exit
PB: predicated region body
PF: predicated region fallthrough
CT: control target
= control target key end

     0   :  { %vm32_vm0 = vcmask 1043456   ;;  %vm19_vm1 = vcmask 97280   ;;  %vm193_vm2 = vmmov 1   ;;  %vm121_vm4 = vcmask 261120   ;;  %s250_s1 = inlined_call_operand.vmem [shape: f32[12,32], index: 1, kind: input, shape index: {}]   ;;  %s251_s0 = inlined_call_operand.vmem [shape: f32[32,12], index: 0, kind: input, shape index: {}]   ;;  %s252_s2 = inlined_call_operand.vmem [shape: f32[1,1,32], index: 2, kind: output, shape index: {0}]   ;;  %s253_s3 = inlined_call_operand.vmem [shape: f32[1,1,32], index: 3, kind: output, shape index: {1}]  }
   0x1   :  { %v17_v0 = vld [vmem:[%s250_s1] sm:$0xff]  ;;  %v18_v1 = vld [vmem:[%s250_s1 + $0x8] sm:$0xf]  ;;  %vm185_vm3 = vmpackc.low %vm32_vm0, %vm193_vm2  ;;  %vm135_vm5 = vcmask 253952  }
   0x2   :  { %v184_v2 = vpack.c.bf16 %v18_v1, %v17_v0  ;;  %v13_v3 = vld [vmem:[%s251_s0] sm:$0xff]  ;;  %v15_v4 = vld [vmem:[%s251_s0 + $0x10] sm:$0xff]  ;;  %v14_v5 = vld [vmem:[%s251_s0 + $0x8] sm:$0xff] }
   0x3   :  { %178 = vmatprep.mubr.msk.f32.mxu0 %vm19_vm1, %v13_v3  ;;  %181 = vmatprep.mubr.msk.f32.mxu1 %vm19_vm1, %v15_v4  ;;  %v16_v6 = vld [vmem:[%s251_s0 + $0x18] sm:$0xff] }
   0x4   :  { %186 = vmatprep.subr.msk.bf16.mxu0 %vm185_vm3, %v184_v2  ;;  %190 = vmatprep.subr.msk.bf16.mxu1 %vm185_vm3, %v184_v2 }
   0x5   :  { %189 = vmatpush3.bf16.msk.msra.mxu0 %vm185_vm3, %v184_v2  ;;  %191 = vmatpush3.bf16.msk.msra.mxu1 %vm185_vm3, %v184_v2 }
   0x8   :  { %179 = vmatmul.mubr.msk.f32.vlgmr.msra.gmra.mrb[0].mxu0 %vm19_vm1, %v14_v5  ;;  %182 = vmatmul.mubr.msk.f32.vlgmr.msra.gmra.mrb[0].mxu1 %vm19_vm1, %v16_v6 }
  0xdb   :  { %v180_v7 = vpop.f32.mrb[0].mxu0  ;;  %v183_v8 = vpop.f32.mrb[0].mxu1 }
  0xdc   :  { %v123_v9 = vsel %vm121_vm4, %v180_v7, 0.0  ;;  %v138_v10 = vmul.f32 %v180_v7, %v180_v7  ;;  %v102_v11 = vpop.f32.mrb[1].mxu0  ;;  %v112_v12 = vpop.f32.mrb[1].mxu1  ;;  %v140_v20 = vmul.f32 %v183_v8, %v183_v8  ;;  %v127_v24 = vsel %vm121_vm4, %v183_v8, 0.0 }
  0xdd   :  { %v122_v13 = vsel %vm121_vm4, %v102_v11, 0.0  ;;  %v137_v14 = vmul.f32 %v102_v11, %v102_v11  ;;  %v125_v15 = vsel %vm121_vm4, %v112_v12, 0.0  ;;  %v139_v16 = vmul.f32 %v112_v12, %v112_v12 }
  0xde   :  { %v142_v17 = vsel %vm121_vm4, %v138_v10, 0.0  ;;  %v124_v18 = vadd.f32 %v123_v9, %v122_v13  ;;  %v146_v27 = vsel %vm121_vm4, %v140_v20, 0.0 }
  0xdf   :  { %v141_v19 = vsel %vm121_vm4, %v137_v14, 0.0  ;;  %v144_v21 = vsel %vm121_vm4, %v139_v16, 0.0 }
  0xe0   :  { %v143_v22 = vadd.f32 %v142_v17, %v141_v19  ;;  %v126_v23 = vadd.f32 %v125_v15, %v124_v18 }
  0xe2   :  { %v128_v25 = vadd.f32 %v127_v24, %v126_v23  ;;  %v145_v26 = vadd.f32 %v144_v21, %v143_v22 }
  0xe4   :  { %v129_v28 = vrot.slane %v128_v25, 4  ;;  %v147_v29 = vadd.f32 %v146_v27, %v145_v26 }
  0xe6   :  { %v130_v30 = vadd.f32 %v129_v28, %v128_v25  ;;  %v148_v31 = vrot.slane %v147_v29, 4 }
  0xe8   :  { %v131_v32 = vrot.slane %v130_v30, 2  ;;  %v149_v33 = vadd.f32 %v148_v31, %v147_v29 }
  0xea   :  { %v132_v34 = vadd.f32 %v131_v32, %v130_v30  ;;  %v150_v35 = vrot.slane %v149_v33, 2 }
  0xec   :  { %v133_v36 = vrot.slane %v132_v34, 1  ;;  %v151_v37 = vadd.f32 %v150_v35, %v149_v33 }
  0xee   :  { %v134_v38 = vadd.f32 %v133_v36, %v132_v34  ;;  %v152_v39 = vrot.slane %v151_v37, 1 }
  0xf0   :  { %136 = vst.msk [vmem:[%s252_s2] sm:$0x1] %vm135_vm5, %v134_v38  ;;  %v153_v40 = vadd.f32 %v152_v39, %v151_v37 }
  0xf2   :  { %154 = vst.msk [vmem:[%s253_s3] sm:$0x1] %vm135_vm5, %v153_v40 }

</bundles_post_ra>
